<compile_context>
chip_gen: v7x
topology: tpu7x:2x2x1
jax: 0.10.0
libtpu: 0.0.40
codegen_flags: <defaults>
</compile_context>

<pallas_src>
import math
from functools import partial

import jax
import jax.numpy as jnp
from jax.experimental import pallas as pl
from jax.experimental.pallas import tpu as pltpu


# ----------------------------------------------------------------------------
# helpers
# ----------------------------------------------------------------------------
def _cdiv(a, b):
    return -(-a // b)


def _round_up(x, m):
    return _cdiv(x, m) * m


def _sublane(dtype):
    # native sublane packing: f32 -> 8 rows, bf16 -> 16, int8/fp8 -> 32
    return max(8, 32 // jnp.dtype(dtype).itemsize)


# ----------------------------------------------------------------------------
# kernels
# ----------------------------------------------------------------------------
def _linear_kernel_resident(x_ref, w_ref, b_ref, o_ref):
    """Single K block: full weight (and bias) VMEM-resident.  No reduction
    grid axis, no accumulator scratch; x and out stream over HBM once."""
    x = x_ref[...]
    w = w_ref[...]
    if x.dtype != w.dtype:          # static (trace-time) branch
        x = x.astype(w.dtype)       # e.g. f32 activations -> bf16 MXU operands
    o_ref[...] = (
        jnp.dot(x, w, preferred_element_type=jnp.float32) + b_ref[...]
    ).astype(o_ref.dtype)


def _linear_kernel_acc(x_ref, w_ref, b_ref, o_ref, acc_ref):
    """Multi K-step path (large D_in): f32 VMEM accumulator across the
    innermost ('arbitrary') K axis.  First step writes the partial product
    directly (no zero-init round trip); last step fuses accumulate + bias +
    cast + store (no extra accumulator write/read on the epilogue)."""
    k = pl.program_id(2)
    nk = pl.num_programs(2)         # always >= 2 on this dispatch path
    x = x_ref[...]
    w = w_ref[...]
    if x.dtype != w.dtype:
        x = x.astype(w.dtype)
    p = jnp.dot(x, w, preferred_element_type=jnp.float32)

    @pl.when(k == 0)
    def _():
        acc_ref[...] = p

    @pl.when(jnp.logical_and(k > 0, k < nk - 1))
    def _():
        acc_ref[...] += p

    @pl.when(k == nk - 1)
    def _():
        o_ref[...] = (acc_ref[...] + p + b_ref[...]).astype(o_ref.dtype)


# ----------------------------------------------------------------------------
# one-time weight/bias preparation (pad + cast; do NOT redo per forward call)
# ----------------------------------------------------------------------------
def prepare_linear(w, b, *, compute_dtype=None, tn_cap=512, tk_cap=512,
                   max_resident_k=512):
    """w: [D_in, D_out], b: [D_out] -> prepared params dict."""
    d_in, d_out = w.shape
    op_dtype = jnp.dtype(compute_dtype) if compute_dtype is not None else jnp.dtype(w.dtype)

    # --- N (lane) axis: pad weight/bias to a 128 multiple -> unmasked vst ---
    n_pad = _round_up(d_out, 128)
    n_tiles = _cdiv(n_pad, tn_cap)
    tn = _round_up(_cdiv(n_pad, n_tiles), 128)

    # --- K (reduction) axis: resident weight if small, else even K split ---
    k_resident = _round_up(d_in, 128) <= max_resident_k
    if not k_resident:
        k_tiles = _cdiv(_round_up(d_in, 128), tk_cap)
        tk = _round_up(_cdiv(d_in, k_tiles), 128)
        k_pad = _cdiv(d_in, tk) * tk
        if k_pad // tk < 2:         # safety: accumulator kernel needs >= 2 steps
            k_resident = True
    if k_resident:
        tk, k_pad = d_in, d_in      # full-dim K block, no padding needed

    w_p = w.astype(op_dtype)
    if (k_pad, n_pad) != (d_in, d_out):
        w_p = jnp.pad(w_p, ((0, k_pad - d_in), (0, n_pad - d_out)))
    b_p = b.astype(jnp.float32)
    if n_pad != d_out:
        b_p = jnp.pad(b_p, (0, n_pad - d_out))
    b_p = b_p.reshape(1, n_pad)

    return dict(w=w_p, b=b_p, d_in=d_in, d_out=d_out, n_pad=n_pad, tn=tn,
                k_pad=k_pad, tk=tk, k_resident=k_resident, op_dtype=op_dtype)


# ----------------------------------------------------------------------------
# forward
# ----------------------------------------------------------------------------
def linear_apply(x, params, *, tm_cap=1024, vmem_budget=12 * 1024 * 1024):
    """x: [N, D_in] with prepared params -> [N, D_out]."""
    n_rows, d_in = x.shape
    assert d_in == params["d_in"], "in_channels mismatch"
    d_out, n_pad, tn = params["d_out"], params["n_pad"], params["tn"]
    k_pad, tk, k_resident = params["k_pad"], params["tk"], params["k_resident"]
    w_p, b_p = params["w"], params["b"]
    out_dtype = x.dtype
    op_dtype = params["op_dtype"]

    # K padding of the activation is only needed on the multi-K-step path.
    if k_pad != d_in:
        x = jnp.pad(x, ((0, 0), (0, k_pad - d_in)))

    # --- M tiling: even split (minimal ragged waste), dtype-native sublanes ---
    sub = _sublane(op_dtype)
    m_tiles = _cdiv(n_rows, tm_cap)
    tm = max(sub, _round_up(_cdiv(n_rows, m_tiles), sub))
    # v7x has 2 TensorCores: keep >= 2 'parallel' M tiles when M is large.
    if _cdiv(n_rows, tm) == 1 and n_rows >= 512:
        tm = _round_up(_cdiv(n_rows, 2), sub)

    # --- keep double-buffered blocks inside every generation's scoped VMEM ---
    def vmem_bytes(tm_):
        xb = 2 * tm_ * tk * x.dtype.itemsize
        wb = 2 * tk * tn * jnp.dtype(op_dtype).itemsize
        ob = 2 * tm_ * tn * jnp.dtype(out_dtype).itemsize
        ab = 0 if k_resident else tm_ * tn * 4
        return xb + wb + ob + ab + (1 << 16)

    while vmem_bytes(tm) > vmem_budget and tm > sub:
        tm = max(sub, _round_up(tm // 2, sub))

    m_tiles = _cdiv(n_rows, tm)
    n_tiles = _cdiv(n_pad, tn)
    cparams = dict(vmem_limit_bytes=32 * 1024 * 1024)  # <= physical on v5e/v6e/v7x

    if k_resident:
        out = pl.pallas_call(
            _linear_kernel_resident,
            out_shape=jax.ShapeDtypeStruct((n_rows, n_pad), out_dtype),
            grid_spec=pltpu.PrefetchScalarGridSpec(
                num_scalar_prefetch=0,
                grid=(m_tiles, n_tiles),
                in_specs=[
                    # x block index constant in j -> big x tile stays resident
                    # while the small weight/bias tiles stream underneath.
                    pl.BlockSpec((tm, k_pad), lambda i, j: (i, 0)),
                    pl.BlockSpec((k_pad, tn), lambda i, j: (0, j)),
                    pl.BlockSpec((1, tn), lambda i, j: (0, j)),
                ],
                out_specs=pl.BlockSpec((tm, tn), lambda i, j: (i, j)),
            ),
            compiler_params=pltpu.CompilerParams(
                dimension_semantics=("parallel", "parallel"), **cparams),
        )(x, w_p, b_p)
    else:
        k_tiles = k_pad // tk
        out = pl.pallas_call(
            _linear_kernel_acc,
            out_shape=jax.ShapeDtypeStruct((n_rows, n_pad), out_dtype),
            grid_spec=pltpu.PrefetchScalarGridSpec(
                num_scalar_prefetch=0,
                grid=(m_tiles, n_tiles, k_tiles),
                in_specs=[
                    pl.BlockSpec((tm, tk), lambda i, j, k: (i, k)),
                    pl.BlockSpec((tk, tn), lambda i, j, k: (k, j)),
                    # constant block index across K -> bias stays resident
                    pl.BlockSpec((1, tn), lambda i, j, k: (0, j)),
                ],
                out_specs=pl.BlockSpec((tm, tn), lambda i, j, k: (i, j)),
                scratch_shapes=[pltpu.VMEM((tm, tn), jnp.float32)],
            ),
            compiler_params=pltpu.CompilerParams(
                dimension_semantics=("parallel", "parallel", "arbitrary"),
                **cparams),
        )(x, w_p, b_p)

    if n_pad != d_out:
        out = out[:, :d_out]
    return out


def linear_forward(x, w, b, *, compute_dtype=None, tm_cap=1024, tn_cap=512,
                   tk_cap=512, max_resident_k=512, force_pallas=False):
    """One-shot convenience wrapper.  For repeated application prefer
    `make_linear` (weight prepared once)."""
    n_rows, d_in = x.shape
    d_out = w.shape[1]
    # Tiny problems: us-scale launch/pipeline overhead dominates; let XLA do it.
    if not force_pallas and (2 * n_rows * d_in * d_out) < (1 << 20):
        return (jnp.dot(x, w) + b[None, :]).astype(x.dtype)
    params = prepare_linear(w, b, compute_dtype=compute_dtype, tn_cap=tn_cap,
                            tk_cap=tk_cap, max_resident_k=max_resident_k)
    return linear_apply(x, params, tm_cap=tm_cap)


def make_linear(w, b, *, compute_dtype=None, tm_cap=1024, tn_cap=512,
                tk_cap=512, max_resident_k=512):
    """Prepare (pad/cast) the weight once and return a jitted forward fn."""
    params = prepare_linear(w, b, compute_dtype=compute_dtype, tn_cap=tn_cap,
                            tk_cap=tk_cap, max_resident_k=max_resident_k)

    def fwd(x):
        return linear_apply(x, params, tm_cap=tm_cap)

    return jax.jit(fwd)


# ----------------------------------------------------------------------------
# parameter init (matches PyG Linear: kaiming_uniform a=sqrt(5), zero bias)
# ----------------------------------------------------------------------------
def init_params(key, in_dim, out_dim, bias=True, dtype=jnp.float32):
    bound = 1.0 / math.sqrt(in_dim)          # gain*sqrt(3/fan) with a=sqrt(5)
    w_t = jax.random.uniform(key, (out_dim, in_dim),
                             minval=-bound, maxval=bound, dtype=dtype)
    w = w_t.T                                # store transposed: [D_in, D_out]
    b = jnp.zeros((out_dim,), dtype=dtype)   # zeros bias (== no-op when bias=False)
    return w, b


# ----------------------------------------------------------------------------
# test harness
# ----------------------------------------------------------------------------
if __name__ == "__main__":
    key = jax.random.PRNGKey(0)
    k1, k2, k3, k4, k5, k6 = jax.random.split(key, 6)

    # --- tiny module-scale shape: fallback path + forced-Pallas padded path ---
    x_s = jax.random.normal(k1, (8, 32), dtype=jnp.float32)
    w_s, b_s = init_params(k2, 32, 16)
    y_ref_s = x_s @ w_s + b_s[None, :]
    y_fb = jax.block_until_ready(linear_forward(x_s, w_s, b_s))
    y_pl = jax.block_until_ready(linear_forward(x_s, w_s, b_s, force_pallas=True))
    assert y_fb.shape == (8, 16) and y_pl.shape == (8, 16)
    assert jnp.allclose(y_fb, y_ref_s, atol=1e-5, rtol=1e-5)
    assert jnp.allclose(y_pl, y_ref_s, atol=1e-4, rtol=1e-4)

    # --- SGFormer streaming regime: many nodes, small feature dims ---
    # single-K resident-weight kernel, ragged M (no x pad), 2 parallel M tiles
    N, D_IN, D_OUT = 1000, 192, 64
    x_m = jax.random.normal(k3, (N, D_IN), dtype=jnp.float32)
    w_m, _ = init_params(k4, D_IN, D_OUT)
    b_m = 0.1 * jax.random.normal(k5, (D_OUT,), dtype=jnp.float32)
    y_ref_m = x_m @ w_m + b_m[None, :]

    lin = make_linear(w_m, b_m)                      # weight prepped once, jitted
    y_m = jax.block_until_ready(lin(x_m))
    assert y_m.shape == (N, D_OUT)
    assert jnp.allclose(y_m, y_ref_m, atol=1e-4, rtol=1e-4)

    # bf16 operands / f32 accumulation (preferred on v6e / v7x)
    lin_bf = make_linear(w_m, b_m, compute_dtype=jnp.bfloat16)
    y_bf = jax.block_until_ready(lin_bf(x_m))
    assert jnp.allclose(y_bf, y_ref_m, atol=5e-2, rtol=5e-2)

    # --- multi-K accumulator path (D_in above the resident-weight threshold) ---
    N2, D_IN2, D_OUT2 = 264, 704, 96
    x_l = jax.random.normal(k6, (N2, D_IN2), dtype=jnp.float32)
    w_l, _ = init_params(k2, D_IN2, D_OUT2)
    b_l = 0.05 * jnp.arange(D_OUT2, dtype=jnp.float32)
    y_ref_l = x_l @ w_l + b_l[None, :]
    y_l = jax.block_until_ready(linear_forward(x_l, w_l, b_l, force_pallas=True))
    assert y_l.shape == (N2, D_OUT2)
    assert jnp.allclose(y_l, y_ref_l, atol=2e-4, rtol=2e-4)

    print("KERNEL_OK")
</pallas_src>

<mosaic_0001>
module attributes {stable_mosaic.version = 11 : i64} {
  func.func @_linear_kernel_resident(%arg0: i32, %arg1: i32, %arg2: memref<8x32xf32, #tpu.memory_space<vmem>>, %arg3: memref<32x128xf32, #tpu.memory_space<vmem>>, %arg4: memref<1x128xf32, #tpu.memory_space<vmem>>, %arg5: memref<8x128xf32, #tpu.memory_space<vmem>>) attributes {dimension_semantics = [#tpu.dimension_semantics<parallel>, #tpu.dimension_semantics<parallel>], iteration_bounds = array<i64: 1, 1>, scalar_prefetch = 0 : i64, scratch_operands = 0 : i64, tpu.core_type = #tpu.core_type<tc>, window_params = [{transform_indices = @transform_0, window_bounds = array<i64: 8, 32>}, {transform_indices = @transform_1, window_bounds = array<i64: 32, 128>}, {transform_indices = @transform_2, window_bounds = array<i64: 1, 128>}, {transform_indices = @transform_3, window_bounds = array<i64: 8, 128>}]} {
    %c0 = arith.constant 0 : index
    %c0_0 = arith.constant 0 : index
    %0 = vector.load %arg2[%c0, %c0_0] : memref<8x32xf32, #tpu.memory_space<vmem>>, vector<8x32xf32>
    %c0_1 = arith.constant 0 : index
    %c0_2 = arith.constant 0 : index
    %1 = vector.load %arg3[%c0_1, %c0_2] : memref<32x128xf32, #tpu.memory_space<vmem>>, vector<32x128xf32>
    %cst = arith.constant dense<0.000000e+00> : vector<8x128xf32>
    %2 = tpu.matmul %0, %1, %cst {dimension_numbers = #tpu.dot_dimension_numbers<[1], [0], [0], [1], [0, 0, 1, 1], [], []>} : vector<8x32xf32>, vector<32x128xf32>, vector<8x128xf32> -> vector<8x128xf32>
    %c0_3 = arith.constant 0 : index
    %c0_4 = arith.constant 0 : index
    %3 = vector.load %arg4[%c0_3, %c0_4] : memref<1x128xf32, #tpu.memory_space<vmem>>, vector<1x128xf32>
    %4 = vector.broadcast %3 : vector<1x128xf32> to vector<8x128xf32>
    %5 = arith.addf %2, %4 : vector<8x128xf32>
    %c0_5 = arith.constant 0 : index
    %c0_6 = arith.constant 0 : index
    %6 = vector.load %arg5[%c0_5, %c0_6] : memref<8x128xf32, #tpu.memory_space<vmem>>, vector<8x128xf32>
    tpu.vector_store %arg5[%c0_5, %c0_6], %5 {strides = array<i32>} : memref<8x128xf32, #tpu.memory_space<vmem>>, vector<8x128xf32>,
    return
  }
  func.func @transform_0(%arg0: i32, %arg1: i32) -> (i32, i32) {
    %c0_i32 = arith.constant 0 : i32
    %c0_i32_0 = arith.constant 0 : i32
    return %arg0, %c0_i32 : i32, i32
  }
  func.func @transform_1(%arg0: i32, %arg1: i32) -> (i32, i32) {
    %c0_i32 = arith.constant 0 : i32
    %c0_i32_0 = arith.constant 0 : i32
    return %c0_i32, %arg1 : i32, i32
  }
  func.func @transform_2(%arg0: i32, %arg1: i32) -> (i32, i32) {
    %c0_i32 = arith.constant 0 : i32
    %c0_i32_0 = arith.constant 0 : i32
    return %c0_i32, %arg1 : i32, i32
  }
  func.func @transform_3(%arg0: i32, %arg1: i32) -> (i32, i32) {
    %c0_i32 = arith.constant 0 : i32
    return %arg0, %arg1 : i32, i32
  }
}

</mosaic_0001>

<bundles_post_ra>
// kernel: tpu_custom_call.1
= control target key start
LH: loop header
LB: loop body
LE: loop exit
PB: predicated region body
PF: predicated region fallthrough
CT: control target
= control target key end

     0   :  { %8 = vsyncpa [#allocation3], 0  ;;  %s322_s0 = inlined_call_operand.hbm [shape: f32[8,32], index: 0, kind: input, shape index: {}]   ;;  %s323_s1 = inlined_call_operand.hbm [shape: f32[32,128], index: 1, kind: input, shape index: {}]   ;;  %s324_s2 = inlined_call_operand.vmem [shape: f32[1,128], index: 2, kind: input, shape index: {}]   ;;  %s325_s3 = inlined_call_operand.hbm [shape: f32[8,128], index: 3, kind: output, shape index: {}]  }
   0x1   :  { %9 = vsyncpa [#allocation6], 0 }
   0x2   :  { %10 = vsyncpa [#allocation4], 0  ;;  %s248_s12 = smov [#allocation2]   ;;  %s249_s14 = smov [#allocation5]  }
   0x3   :  { %s17_s13 = sshll.u32 %s248_s12, 4  ;;  %s26_s15 = sshll.u32 %s249_s14, 4  ;;  %s18_s13 = int_to_ptr.vmem [resolvable:$true] %s17_s13  ;;  %s276_s15 = int_to_ptr.vmem [resolvable:$true] %s26_s15 }
   0x4   :  { %s176_s18 = scalar_lea.hbm %s322_s0, 128 }
   0x5   :  { %p177_p0 = scmp.ne.s32.totalorder %s322_s0, %s176_s18  ;;  %p180_p1 = scmp.lt.u32.totalorder %s176_s18, %s322_s0 }
   0x7   :  { %p182_p2 = pnand %p180_p1, %p177_p0 }
   0x9   :  { %185 = shalt.err (!%p182_p2)
}
   0xa   :  { %s186_s23 = scalar_lea.vmem %s18_s13, 128  ;;  %p191_p4 = scmp.lt.s32.totalorder %s18_s13, %s18_s13 }
   0xb   :  { %p187_p3 = scmp.ne.s32.totalorder %s18_s13, %s186_s23  ;;  %p192_p5 = scmp.lt.s32.totalorder %s186_s23, %s186_s23 }
   0xd   :  { %p193_p6 = por %p192_p5, %p191_p4 }
   0xf   :  { %p194_p7 = pnand %p193_p6, %p187_p3 }
  0x11   :  { %197 = shalt.err (!%p194_p7)
}
  0x12   :  { %20 = dma.hbm_to_vmem [thread:$0]  %s322_s0, 128, %s18_s13, [#allocation3]  }
  0x13   :  { %s198_s28 = scalar_lea.hbm %s323_s1, 512 }
  0x14   :  { %p199_p8 = scmp.ne.s32.totalorder %s323_s1, %s198_s28  ;;  %p202_p9 = scmp.lt.u32.totalorder %s198_s28, %s323_s1 }
  0x16   :  { %p204_p10 = pnand %p202_p9, %p199_p8 }
  0x18   :  { %207 = shalt.err (!%p204_p10)
}
  0x19   :  { %s208_s6 = scalar_lea.vmem %s276_s15, 512  ;;  %p213_p12 = scmp.lt.s32.totalorder %s276_s15, %s276_s15 }
  0x1a   :  { %p209_p11 = scmp.ne.s32.totalorder %s276_s15, %s208_s6  ;;  %p214_p13 = scmp.lt.s32.totalorder %s208_s6, %s208_s6 }
  0x1c   :  { %p215_p0 = por %p214_p13, %p213_p12 }
  0x1e   :  { %p216_p1 = pnand %p215_p0, %p209_p11 }
  0x20   :  { %219 = shalt.err (!%p216_p1)
}
  0x21   :  { %s250_s0 = smov 128   ;;  %s251_s7 = smov 8  }
  0x22   :  { %32 = dma.hbm_to_vmem [thread:$0]  %s323_s1, 512, %s276_s15, [#allocation6], %s250_s0, %s250_s0, %s251_s7  }
  0x23   :  { %242 = dma.done.wait [#allocation3], 128  }
  0x24   :  { %243 = vsyncadd [#allocation3], 4294967168 }
  0x25   :  { %244 = dma.done.wait [#allocation6], 512  }
  0x26   :  { %245 = vsyncadd [#allocation6], 4294966784  ;;  %v252_v0 = vmov 0.0|0.0   ;;  %vm253_vm0 = vmmov 0   ;;  %v254_v1 = vmov 0.0   ;;  %v42_v2 = vld [vmem:[#allocation5] sm:$0xff] }
  0x27   :  { %162 = vmatprep.subr.bf16.mxu0 %v252_v0  ;;  %159 = vmatprep.mubr.msk.f32.mxu0 %vm253_vm0, %v254_v1  ;;  %v43_v3 = vld [vmem:[#allocation5 + $0x8] sm:$0xff]  ;;  %v44_v4 = vld [vmem:[#allocation5 + $0x10] sm:$0xff]  ;;  %v45_v6 = vld [vmem:[#allocation5 + $0x18] sm:$0xff]  ;;  %vm53_vm1 = vcmask 261120   ;;  %s255_s11 = smov [#allocation7]  }
  0x28   :  { %v163_v5 = vpack.c.bf16 %v43_v3, %v42_v2  ;;  %v166_v7 = vpack.c.bf16 %v45_v6, %v44_v4  ;;  %v41_v8 = vld [vmem:[#allocation2] sm:$0xff]  ;;  %s134_s12 = sshll.u32 %s255_s11, 4  ;;  %s135_s12 = int_to_ptr.vmem [resolvable:$true] %s134_s12 }
  0x29   :  { %v144_v9 = vld [vmem:[%s324_s2] ss:$0 sm:$0xff]  ;;  %s220_s13 = scalar_lea.vmem %s135_s12, 128  ;;  %p225_p3 = scmp.lt.s32.totalorder %s135_s12, %s135_s12 }
  0x2a   :  { %164 = vmatpush3.bf16.msra.mxu0 %v163_v5  ;;  %p221_p2 = scmp.ne.s32.totalorder %s135_s12, %s220_s13  ;;  %p226_p4 = scmp.lt.s32.totalorder %s220_s13, %s220_s13 }
  0x2b   :  { %165 = vmatprep.subr.bf16.mxu0 %v252_v0 }
  0x2c   :  { %p227_p5 = por %p226_p4, %p225_p3 }
  0x2e   :  { %167 = vmatpush3.bf16.msra.mxu0 %v166_v7  ;;  %p228_p6 = pnand %p227_p5, %p221_p2 }
  0x31   :  { %160 = vmatmul.mubr.msk.f32.vlgmr.msra.gmra.mrb[0].mxu0 %vm53_vm1, %v41_v8 }
 0x104   :  { %v123_v10 = vpop.f32.mrb[0].mxu0 }
 0x105   :  { %v124_v11 = vadd.f32 %v144_v9, %v123_v10  ;;  %v161_v12 = vpop.f32.mrb[1].mxu0 }
 0x107   :  { %127 = vst [vmem:[#allocation7] sm:$0xff] %v124_v11 }
 0x108   :  { %231 = shalt.err (!%p228_p6)
}
 0x109   :  { %s232_s16 = scalar_lea.hbm %s325_s3, 128 }
 0x10a   :  { %p233_p7 = scmp.ne.s32.totalorder %s325_s3, %s232_s16  ;;  %p236_p8 = scmp.lt.u32.totalorder %s232_s16, %s325_s3 }
 0x10c   :  { %p238_p9 = pnand %p236_p8, %p233_p7 }
 0x10e   :  { %241 = shalt.err (!%p238_p9)
}
 0x10f   :  { %137 = dma.vmem_to_hbm [thread:$0]  %s135_s12, 128, %s325_s3, [#allocation4]  }
 0x110   :  { %246 = dma.done.wait [#allocation4], 128  }
 0x111   :  { %247 = vsyncadd [#allocation4], 4294967168 }
 0x112   :  { %141 = vsyncpa [#allocation3], 1 }
 0x113   :  { %142 = vsyncpa [#allocation6], 1 }
 0x114   :  { %143 = vsyncpa [#allocation4], 1 }

</bundles_post_ra>
